<compile_context>
chip_gen: v7x
topology: tpu7x:2x2x1
jax: 0.10.0
libtpu: 0.0.40
codegen_flags: <defaults>
</compile_context>

<pallas_src>
import functools

import jax
import jax.numpy as jnp
import numpy as np
from jax.experimental import pallas as pl
from jax.experimental.pallas import tpu as pltpu


# ----------------------------- fused kernel ---------------------------------


def fused_kernel(x1p_ref, w_ref, b_ref, x2_ref, o_ref, *, scale_mul, p, d_qk, cin):
    # x1p: (1, Cin, Hp, Wp)  zero-padded input
    # w:   (d_qk, Cin)
    # b:   (d_qk, 1)
    # x2:  (1, C2, M, N)     C2 in {1, d_qk}
    # o:   (1, d_qk, Hp, N)
    if p >= 1.0:
        # torch dropout with p=1 (training mode) zeroes everything: skip all compute.
        o_ref[...] = jnp.zeros_like(o_ref)
        return

    x1p = x1p_ref[0]                              # (Cin, Hp, Wp)
    w = w_ref[...]                                # (d_qk, Cin)
    b = b_ref[...]                                # (d_qk, 1)

    # --- 1x1 conv with padding=1: VPU FMAs over the Cin input channels. Border
    # pixels of the zero-padded input contribute nothing, so they come out as
    # pure bias, exactly matching Conv2d(3, d_qk, 1, padding=1).
    q3 = b[:, :, None]                            # (d_qk, 1, 1)
    for i in range(cin):
        q3 = q3 + w[:, i:i + 1, None] * x1p[i:i + 1]   # -> (d_qk, Hp, Wp)

    # --- attention chain over all heads at once; kv broadcast only in VMEM.
    kvb = x2_ref[0]                               # (C2, M, N)
    kv3 = jnp.broadcast_to(kvb, (d_qk,) + kvb.shape[1:])  # (d_qk, M, N)

    s = jnp.einsum("chd,ckd->chk", q3, kv3,
                   preferred_element_type=jnp.float32)     # (d_qk, Hp, M)
    s = s * scale_mul                             # == qk.div(d_qk ** -0.5)
    m = jnp.max(s, axis=-1, keepdims=True)
    e = jnp.exp(s - m)
    denom = jnp.sum(e, axis=-1, keepdims=True)
    soft = e * pl.reciprocal(denom, approx=True)
    if p > 0.0:
        # TODO(synk): stochastic dropout for 0<p<1 (torch RNG not reproducible);
        # only the expected 1/(1-p) scaling is applied here.
        soft = soft * (1.0 / (1.0 - p))
    out = jnp.einsum("chk,ckd->chd", soft, kv3,
                     preferred_element_type=jnp.float32)    # (d_qk, Hp, N)
    o_ref[0] = out.astype(o_ref.dtype)


# ----------------------------- wrapper ---------------------------------------


def model_forward(x1, x2, weight, bias, d_qk, dropout_p):
    B, Cin, H, W = x1.shape
    Hp, Wp = H + 2, W + 2
    B2, C2, M, N = x2.shape
    assert B2 == B, "batch dims must match"
    assert Wp == N, "x2 trailing dim must match padded conv output width"
    assert C2 in (1, d_qk), "x2 channel dim must broadcast against d_qk"

    # Zero-pad the tiny 3-channel input once (~KBs); everything else is fused.
    x1p = jnp.pad(x1, ((0, 0), (0, 0), (1, 1), (1, 1)))
    w2 = weight.reshape(d_qk, Cin)
    b2 = bias.reshape(d_qk, 1)

    kern = functools.partial(
        fused_kernel,
        scale_mul=float(d_qk) ** 0.5,
        p=float(dropout_p),
        d_qk=int(d_qk),
        cin=int(Cin),
    )
    return pl.pallas_call(
        kern,
        out_shape=jax.ShapeDtypeStruct((B, d_qk, Hp, N), x1.dtype),
        grid=(B,),
        in_specs=[
            pl.BlockSpec((1, Cin, Hp, Wp), lambda bb: (bb, 0, 0, 0)),
            pl.BlockSpec((d_qk, Cin), lambda bb: (0, 0)),
            pl.BlockSpec((d_qk, 1), lambda bb: (0, 0)),
            pl.BlockSpec((1, C2, M, N), lambda bb: (bb, 0, 0, 0)),
        ],
        out_specs=pl.BlockSpec((1, d_qk, Hp, N), lambda bb: (bb, 0, 0, 0)),
        compiler_params=pltpu.CompilerParams(
            dimension_semantics=("parallel",)),
    )(x1p, w2, b2, x2)


def reference(x1, x2, weight, bias, d_qk, p):
    # pure-JAX reference of the PyTorch forward
    x1p = jnp.pad(x1, ((0, 0), (0, 0), (1, 1), (1, 1)))
    A = jnp.einsum("bchw,oc->bohw", x1p, weight.reshape(d_qk, -1)) + bias[
        None, :, None, None
    ]
    qk = jnp.matmul(A, jnp.swapaxes(x2, -2, -1))
    scaled = qk / (float(d_qk) ** (-0.5))
    soft = jax.nn.softmax(scaled, axis=-1)
    drop = jnp.zeros_like(soft) if p >= 1.0 else soft
    return jnp.matmul(drop, x2)


# ----------------------------- main ------------------------------------------


if __name__ == "__main__":
    d_qk = 32
    dropout_p = 1.0

    key = jax.random.PRNGKey(0)
    k1, k2, k3, k4 = jax.random.split(key, 4)

    # shapes consistent with the forward: conv(padding=1) makes 14x14 -> 16x16,
    # x2's trailing dim must match 16 and its channel dim must broadcast (C2=1).
    B = 2
    x1 = jax.random.normal(k1, (B, 3, 14, 14), jnp.float32)
    x2 = jax.random.normal(k2, (B, 1, 16, 16), jnp.float32)

    # deterministic Conv2d(3, d_qk, 1) parameters (uniform +/- 1/sqrt(fan_in))
    bound = 1.0 / (3.0 ** 0.5)
    weight = jax.random.uniform(k3, (d_qk, 3, 1, 1), jnp.float32, -bound, bound)
    bias = jax.random.uniform(k4, (d_qk,), jnp.float32, -bound, bound)

    fwd = jax.jit(model_forward, static_argnums=(4, 5))

    # default config: p = 1 -> all zeros (training-mode torch dropout)
    out = jax.block_until_ready(fwd(x1, x2, weight, bias, d_qk, dropout_p))
    ref = reference(x1, x2, weight, bias, d_qk, dropout_p)
    assert out.shape == (B, d_qk, 16, 16)
    np.testing.assert_allclose(np.asarray(out), np.asarray(ref), atol=1e-6, rtol=1e-6)

    # exercise the real compute path (p = 0). Slightly loose tolerance because the
    # in-kernel softmax uses the EUP approximate reciprocal for normalization.
    out0 = jax.block_until_ready(fwd(x1, x2, weight, bias, d_qk, 0.0))
    ref0 = reference(x1, x2, weight, bias, d_qk, 0.0)
    np.testing.assert_allclose(np.asarray(out0), np.asarray(ref0), atol=1e-2, rtol=1e-2)

    print("KERNEL_OK")
</pallas_src>

<mosaic_0001>
module attributes {stable_mosaic.version = 11 : i64} {
  func.func @fused_kernel(%arg0: i32, %arg1: memref<1x3x16x16xf32, #tpu.memory_space<vmem>>, %arg2: memref<32x3xf32, #tpu.memory_space<vmem>>, %arg3: memref<32x1xf32, #tpu.memory_space<vmem>>, %arg4: memref<1x1x16x16xf32, #tpu.memory_space<vmem>>, %arg5: memref<1x32x16x16xf32, #tpu.memory_space<vmem>>) attributes {dimension_semantics = [#tpu.dimension_semantics<parallel>], iteration_bounds = array<i64: 2>, scalar_prefetch = 0 : i64, scratch_operands = 0 : i64, tpu.core_type = #tpu.core_type<tc>, window_params = [{transform_indices = @transform_0, window_bounds = array<i64: 1, 3, 16, 16>}, {pipeline_mode = #tpu.pipeline_mode<synchronous>, transform_indices = @transform_1, window_bounds = array<i64: 32, 3>}, {pipeline_mode = #tpu.pipeline_mode<synchronous>, transform_indices = @transform_2, window_bounds = array<i64: 32, 1>}, {transform_indices = @transform_3, window_bounds = array<i64: 1, 1, 16, 16>}, {transform_indices = @transform_4, window_bounds = array<i64: 1, 32, 16, 16>}]} {
    %cst = arith.constant 0.000000e+00 : f32
    %0 = vector.broadcast %cst : f32 to vector<1x32x16x16xf32>
    %c0 = arith.constant 0 : index
    %c0_0 = arith.constant 0 : index
    %c0_1 = arith.constant 0 : index
    %c0_2 = arith.constant 0 : index
    %1 = vector.load %arg5[%c0, %c0_0, %c0_1, %c0_2] : memref<1x32x16x16xf32, #tpu.memory_space<vmem>>, vector<1x32x16x16xf32>
    tpu.vector_store %arg5[%c0, %c0_0, %c0_1, %c0_2], %0 {strides = array<i32>} : memref<1x32x16x16xf32, #tpu.memory_space<vmem>>, vector<1x32x16x16xf32>,
    return
  }
  func.func @transform_0(%arg0: i32) -> (i32, i32, i32, i32) {
    %c0_i32 = arith.constant 0 : i32
    %c0_i32_0 = arith.constant 0 : i32
    %c0_i32_1 = arith.constant 0 : i32
    %c0_i32_2 = arith.constant 0 : i32
    return %arg0, %c0_i32, %c0_i32_0, %c0_i32_1 : i32, i32, i32, i32
  }
  func.func @transform_1(%arg0: i32) -> (i32, i32) {
    %c0_i32 = arith.constant 0 : i32
    %c0_i32_0 = arith.constant 0 : i32
    %c0_i32_1 = arith.constant 0 : i32
    return %c0_i32, %c0_i32_0 : i32, i32
  }
  func.func @transform_2(%arg0: i32) -> (i32, i32) {
    %c0_i32 = arith.constant 0 : i32
    %c0_i32_0 = arith.constant 0 : i32
    %c0_i32_1 = arith.constant 0 : i32
    return %c0_i32, %c0_i32_0 : i32, i32
  }
  func.func @transform_3(%arg0: i32) -> (i32, i32, i32, i32) {
    %c0_i32 = arith.constant 0 : i32
    %c0_i32_0 = arith.constant 0 : i32
    %c0_i32_1 = arith.constant 0 : i32
    %c0_i32_2 = arith.constant 0 : i32
    return %arg0, %c0_i32, %c0_i32_0, %c0_i32_1 : i32, i32, i32, i32
  }
  func.func @transform_4(%arg0: i32) -> (i32, i32, i32, i32) {
    %c0_i32 = arith.constant 0 : i32
    %c0_i32_0 = arith.constant 0 : i32
    %c0_i32_1 = arith.constant 0 : i32
    %c0_i32_2 = arith.constant 0 : i32
    return %arg0, %c0_i32, %c0_i32_0, %c0_i32_1 : i32, i32, i32, i32
  }
}

</mosaic_0001>

<bundles_post_ra>
// kernel: model_forward.1
= control target key start
LH: loop header
LB: loop body
LE: loop exit
PB: predicated region body
PF: predicated region fallthrough
CT: control target
= control target key end

     0   :  { %s403_s15 = smov 0   ;;  %s611_s0 = inlined_call_operand.vmem [shape: f32[2,3,16,16], index: 0, kind: input, shape index: {}]   ;;  %s612_s1 = inlined_call_operand.vmem [shape: f32[32,3], index: 1, kind: input, shape index: {}]   ;;  %s613_s2 = inlined_call_operand.vmem [shape: f32[32,1], index: 2, kind: input, shape index: {}]   ;;  %s614_s3 = inlined_call_operand.vmem [shape: f32[2,1,16,16], index: 3, kind: input, shape index: {}]   ;;  %s615_s4 = inlined_call_operand.vmem [shape: f32[2,32,16,16], index: 4, kind: output, shape index: {}]  }
   0x1 LB: > { %s350_s0 = sadd.s32 4294967295, %s375_s15   ;;  %p354_p0 = scmp.ge.s32.totalorder %s375_s15, 1  ;;  %s375_s15 = sphi %s403_s15, %s14_s15  }
   0x2   : > { %p172_p1 = scmp.lt.s32.totalorder %s375_s15, 3 }
   0x4   : > { %p173_p2 = pnand %p354_p0, %p172_p1 }
   0x5   : > { %p213_p3 = scmp.lt.s32.totalorder (!%p173_p2), %s350_s0, 1  ;;  %vm218_vm0 = vcmask (!%p173_p2), 130048   ;;  %v377_v0 = vmov (!%p173_p2), 0.0  }
   0x6   : > { %176 = sbr.rel (%p173_p2) target bundleno = 48 (0x30), region = 36 }
   0xd   : > { %s617_s0 = smov (!%p213_p3, %s350_s0), 1 }
   0xe   : > { %s359_s1 = sshll.u32 %s617_s0, 9 }
   0xf   : > { %s414_s16 = scalar_lea.vmem %s615_s4, %s359_s1 }
  0x10   : > { %219 = vst.msk [vmem:[%s414_s16] sm:$0xff] %vm218_vm0, %v377_v0  ;;  %220 = vst.msk [vmem:[%s414_s16 + $0x8] sm:$0xff] %vm218_vm0, %v377_v0 }
  0x11   : > { %221 = vst.msk [vmem:[%s414_s16 + $0x10] sm:$0xff] %vm218_vm0, %v377_v0  ;;  %222 = vst.msk [vmem:[%s414_s16 + $0x18] sm:$0xff] %vm218_vm0, %v377_v0 }
  0x12   : > { %223 = vst.msk [vmem:[%s414_s16 + $0x20] sm:$0xff] %vm218_vm0, %v377_v0  ;;  %224 = vst.msk [vmem:[%s414_s16 + $0x28] sm:$0xff] %vm218_vm0, %v377_v0 }
  0x13   : > { %225 = vst.msk [vmem:[%s414_s16 + $0x30] sm:$0xff] %vm218_vm0, %v377_v0  ;;  %226 = vst.msk [vmem:[%s414_s16 + $0x38] sm:$0xff] %vm218_vm0, %v377_v0 }
  0x14   : > { %227 = vst.msk [vmem:[%s414_s16 + $0x40] sm:$0xff] %vm218_vm0, %v377_v0  ;;  %228 = vst.msk [vmem:[%s414_s16 + $0x48] sm:$0xff] %vm218_vm0, %v377_v0 }
  0x15   : > { %229 = vst.msk [vmem:[%s414_s16 + $0x50] sm:$0xff] %vm218_vm0, %v377_v0  ;;  %230 = vst.msk [vmem:[%s414_s16 + $0x58] sm:$0xff] %vm218_vm0, %v377_v0 }
  0x16   : > { %231 = vst.msk [vmem:[%s414_s16 + $0x60] sm:$0xff] %vm218_vm0, %v377_v0  ;;  %232 = vst.msk [vmem:[%s414_s16 + $0x68] sm:$0xff] %vm218_vm0, %v377_v0 }
  0x17   : > { %233 = vst.msk [vmem:[%s414_s16 + $0x70] sm:$0xff] %vm218_vm0, %v377_v0  ;;  %234 = vst.msk [vmem:[%s414_s16 + $0x78] sm:$0xff] %vm218_vm0, %v377_v0 }
  0x18   : > { %235 = vst.msk [vmem:[%s414_s16 + $0x80] sm:$0xff] %vm218_vm0, %v377_v0  ;;  %236 = vst.msk [vmem:[%s414_s16 + $0x88] sm:$0xff] %vm218_vm0, %v377_v0 }
  0x19   : > { %237 = vst.msk [vmem:[%s414_s16 + $0x90] sm:$0xff] %vm218_vm0, %v377_v0  ;;  %238 = vst.msk [vmem:[%s414_s16 + $0x98] sm:$0xff] %vm218_vm0, %v377_v0 }
  0x1a   : > { %239 = vst.msk [vmem:[%s414_s16 + $0xa0] sm:$0xff] %vm218_vm0, %v377_v0  ;;  %240 = vst.msk [vmem:[%s414_s16 + $0xa8] sm:$0xff] %vm218_vm0, %v377_v0 }
  0x1b   : > { %241 = vst.msk [vmem:[%s414_s16 + $0xb0] sm:$0xff] %vm218_vm0, %v377_v0  ;;  %242 = vst.msk [vmem:[%s414_s16 + $0xb8] sm:$0xff] %vm218_vm0, %v377_v0 }
  0x1c   : > { %243 = vst.msk [vmem:[%s414_s16 + $0xc0] sm:$0xff] %vm218_vm0, %v377_v0  ;;  %244 = vst.msk [vmem:[%s414_s16 + $0xc8] sm:$0xff] %vm218_vm0, %v377_v0 }
  0x1d   : > { %245 = vst.msk [vmem:[%s414_s16 + $0xd0] sm:$0xff] %vm218_vm0, %v377_v0  ;;  %246 = vst.msk [vmem:[%s414_s16 + $0xd8] sm:$0xff] %vm218_vm0, %v377_v0 }
  0x1e   : > { %247 = vst.msk [vmem:[%s414_s16 + $0xe0] sm:$0xff] %vm218_vm0, %v377_v0  ;;  %248 = vst.msk [vmem:[%s414_s16 + $0xe8] sm:$0xff] %vm218_vm0, %v377_v0 }
  0x1f   : > { %249 = vst.msk [vmem:[%s414_s16 + $0xf0] sm:$0xff] %vm218_vm0, %v377_v0  ;;  %250 = vst.msk [vmem:[%s414_s16 + $0xf8] sm:$0xff] %vm218_vm0, %v377_v0 }
  0x20   : > { %251 = vst.msk [vmem:[%s414_s16 + $0x100] sm:$0xff] %vm218_vm0, %v377_v0  ;;  %252 = vst.msk [vmem:[%s414_s16 + $0x108] sm:$0xff] %vm218_vm0, %v377_v0 }
  0x21   : > { %253 = vst.msk [vmem:[%s414_s16 + $0x110] sm:$0xff] %vm218_vm0, %v377_v0  ;;  %254 = vst.msk [vmem:[%s414_s16 + $0x118] sm:$0xff] %vm218_vm0, %v377_v0 }
  0x22   : > { %255 = vst.msk [vmem:[%s414_s16 + $0x120] sm:$0xff] %vm218_vm0, %v377_v0  ;;  %256 = vst.msk [vmem:[%s414_s16 + $0x128] sm:$0xff] %vm218_vm0, %v377_v0 }
  0x23   : > { %257 = vst.msk [vmem:[%s414_s16 + $0x130] sm:$0xff] %vm218_vm0, %v377_v0  ;;  %258 = vst.msk [vmem:[%s414_s16 + $0x138] sm:$0xff] %vm218_vm0, %v377_v0 }
  0x24   : > { %259 = vst.msk [vmem:[%s414_s16 + $0x140] sm:$0xff] %vm218_vm0, %v377_v0  ;;  %260 = vst.msk [vmem:[%s414_s16 + $0x148] sm:$0xff] %vm218_vm0, %v377_v0 }
  0x25   : > { %261 = vst.msk [vmem:[%s414_s16 + $0x150] sm:$0xff] %vm218_vm0, %v377_v0  ;;  %262 = vst.msk [vmem:[%s414_s16 + $0x158] sm:$0xff] %vm218_vm0, %v377_v0 }
  0x26   : > { %263 = vst.msk [vmem:[%s414_s16 + $0x160] sm:$0xff] %vm218_vm0, %v377_v0  ;;  %264 = vst.msk [vmem:[%s414_s16 + $0x168] sm:$0xff] %vm218_vm0, %v377_v0 }
  0x27   : > { %265 = vst.msk [vmem:[%s414_s16 + $0x170] sm:$0xff] %vm218_vm0, %v377_v0  ;;  %266 = vst.msk [vmem:[%s414_s16 + $0x178] sm:$0xff] %vm218_vm0, %v377_v0 }
  0x28   : > { %267 = vst.msk [vmem:[%s414_s16 + $0x180] sm:$0xff] %vm218_vm0, %v377_v0  ;;  %268 = vst.msk [vmem:[%s414_s16 + $0x188] sm:$0xff] %vm218_vm0, %v377_v0 }
  0x29   : > { %269 = vst.msk [vmem:[%s414_s16 + $0x190] sm:$0xff] %vm218_vm0, %v377_v0  ;;  %270 = vst.msk [vmem:[%s414_s16 + $0x198] sm:$0xff] %vm218_vm0, %v377_v0 }
  0x2a   : > { %271 = vst.msk [vmem:[%s414_s16 + $0x1a0] sm:$0xff] %vm218_vm0, %v377_v0  ;;  %272 = vst.msk [vmem:[%s414_s16 + $0x1a8] sm:$0xff] %vm218_vm0, %v377_v0 }
  0x2b   : > { %273 = vst.msk [vmem:[%s414_s16 + $0x1b0] sm:$0xff] %vm218_vm0, %v377_v0  ;;  %274 = vst.msk [vmem:[%s414_s16 + $0x1b8] sm:$0xff] %vm218_vm0, %v377_v0 }
  0x2c   : > { %275 = vst.msk [vmem:[%s414_s16 + $0x1c0] sm:$0xff] %vm218_vm0, %v377_v0  ;;  %276 = vst.msk [vmem:[%s414_s16 + $0x1c8] sm:$0xff] %vm218_vm0, %v377_v0 }
  0x2d   : > { %277 = vst.msk [vmem:[%s414_s16 + $0x1d0] sm:$0xff] %vm218_vm0, %v377_v0  ;;  %278 = vst.msk [vmem:[%s414_s16 + $0x1d8] sm:$0xff] %vm218_vm0, %v377_v0 }
  0x2e   : > { %279 = vst.msk [vmem:[%s414_s16 + $0x1e0] sm:$0xff] %vm218_vm0, %v377_v0  ;;  %280 = vst.msk [vmem:[%s414_s16 + $0x1e8] sm:$0xff] %vm218_vm0, %v377_v0 }
  0x2f   : > { %281 = vst.msk [vmem:[%s414_s16 + $0x1f0] sm:$0xff] %vm218_vm0, %v377_v0  ;;  %282 = vst.msk [vmem:[%s414_s16 + $0x1f8] sm:$0xff] %vm218_vm0, %v377_v0 }
  0x30 PF: > { %s14_s15 = sadd.s32 1, %s375_s15  }
  0x31   : > { %p11_p4 = scmp.ge.s32.totalorder %s14_s15, 4  }
  0x33   :  { %13 = sbr.rel (!%p11_p4) target bundleno = 1 (0x1), region = 69 }

</bundles_post_ra>
